<compile_context>
chip_gen: v5e
topology: v5e:2x2
jax: 0.10.0
libtpu: 0.0.40
codegen_flags: <defaults>
</compile_context>

<pallas_src>
import functools

import jax
import jax.numpy as jnp
from jax import lax
from jax.experimental import pallas as pl
from jax.experimental.pallas import tpu as pltpu


def _round_up(n, m):
    return ((n + m - 1) // m) * m


def _head_kernel(x_ref, w1_ref, b1_ref, w2_ref, b2_ref, o_ref, acc_ref, *,
                 inv_s, n_groups, last_full_groups, last_rem):
    s = pl.program_id(1)
    last = pl.num_programs(1) - 1

    @pl.when(s == 0)
    def _():
        acc_ref[...] = jnp.zeros_like(acc_ref)

    tb, c, _ = acc_ref.shape

    def accumulate(num_full, rem):
        # Per-lane partial sums: pure VPU column adds over static 128-lane
        # slices; the widen is fused into the add. No cross-lane (XLU) work
        # and no sub-128-lane accumulator stores in the hot loop.
        part = acc_ref[...]                                    # (TB, C, 128) f32
        for k in range(num_full):
            part = part + x_ref[:, :, k * 128:(k + 1) * 128].astype(jnp.float32)
        if rem:                                                # ragged tail group
            k = num_full
            lane = lax.broadcasted_iota(jnp.int32, (tb, c, 128), 2)
            xk = x_ref[:, :, k * 128:(k + 1) * 128].astype(jnp.float32)
            part = part + jnp.where(lane < rem, xk, 0.0)
        acc_ref[...] = part

    ragged = (last_full_groups != n_groups) or (last_rem != 0)
    if ragged:
        @pl.when(s != last)
        def _():
            accumulate(n_groups, 0)

        @pl.when(s == last)
        def _():
            accumulate(last_full_groups, last_rem)
    else:
        accumulate(n_groups, 0)

    # Finalize once per batch tile: lane reduce -> mean -> fc1 + relu -> fc2.
    @pl.when(s == last)
    def _():
        pooled = jnp.sum(acc_ref[...], axis=-1) * inv_s        # (TB, C)
        h = jnp.dot(pooled, w1_ref[...], preferred_element_type=jnp.float32)
        h = jnp.maximum(h + b1_ref[...], 0.0)                  # (TB, H_pad)
        out = jnp.dot(h, w2_ref[...], preferred_element_type=jnp.float32)
        o_ref[...] = (out + b2_ref[...]).astype(o_ref.dtype)


def prepare_head_params(w1, b1, w2, b2):
    """Pad/transpose the tiny FC params to lane-dense layouts once and reuse
    across calls (zero rows/cols are exact no-ops through matmul/bias/relu).
    nn.Linear layout: w1 [hidden, C], b1 [hidden], w2 [classes, hidden]."""
    hidden, c = w1.shape
    num_classes = w2.shape[0]
    h_pad = _round_up(hidden, 128)
    n_pad = _round_up(num_classes, 128)
    w1t = jnp.zeros((c, h_pad), jnp.float32).at[:, :hidden].set(
        jnp.asarray(w1, jnp.float32).T)
    b1p = jnp.zeros((1, h_pad), jnp.float32).at[:, :hidden].set(
        jnp.asarray(b1, jnp.float32))
    w2t = jnp.zeros((h_pad, n_pad), jnp.float32).at[:hidden, :num_classes].set(
        jnp.asarray(w2, jnp.float32).T)
    b2p = jnp.zeros((1, n_pad), jnp.float32).at[:, :num_classes].set(
        jnp.asarray(b2, jnp.float32))
    return w1t, b1p, w2t, b2p


def classification_head(x_ncdhw, w1t, b1p, w2t, b2p, *, num_classes):
    """x_ncdhw: [B, C, D, H, W]. Params from prepare_head_params.
    Returns [B, num_classes] f32 == fc2(relu(fc1(mean over D*H*W of x)))."""
    B, C = x_ncdhw.shape[0], x_ncdhw.shape[1]
    S = 1
    for d in x_ncdhw.shape[2:]:
        S = S * d
    x3 = x_ncdhw.reshape(B, C, S)                 # free reshape (contiguous)
    elem = jnp.dtype(x3.dtype).itemsize
    h_pad = w1t.shape[1]
    n_pad = w2t.shape[1]

    # --- S handling: no bulk padding; the ragged tail is masked in-kernel.
    #     Only S < 128 gets one tiny zero-pad (exact: we divide by true S).
    if S < 128:
        x3 = jnp.pad(x3, ((0, 0), (0, 0), (0, 128 - S)))
        S_arr = 128
    else:
        S_arr = S

    # --- batch tile: multiple of 8 (or == B). Prefer >= 2 batch grid steps so
    #     the "parallel" axis can feed both TensorCores on v7x.
    if B % 8 == 0:
        TB = 8
        for cand in (32, 16, 8):
            if B % cand == 0 and B // cand >= 2:
                TB = cand
                break
    else:
        TB = B

    # --- spatial tile: largest lane-dense chunk within the per-buffer budget;
    #     shrink TB before letting TS drop below 1024 (DMA row efficiency).
    budget_per_buf = 12 * 1024 * 1024
    ts_ceiling = max(128, (S_arr // 128) * 128)

    def ts_for(tb):
        fit = (budget_per_buf // max(1, tb * C * elem)) // 128 * 128
        return int(max(128, min(fit, ts_ceiling, 8192)))

    TS = ts_for(TB)
    if TS < 1024 and TB > 8 and B % 8 == 0:
        TB = 8
        TS = ts_for(TB)

    n_s = -(-S_arr // TS)
    n_groups = TS // 128
    valid_last = S_arr - (n_s - 1) * TS           # valid elems in last S block
    last_full = valid_last // 128
    last_rem = valid_last % 128

    kernel = functools.partial(
        _head_kernel, inv_s=1.0 / float(S), n_groups=n_groups,
        last_full_groups=last_full, last_rem=last_rem)

    # Deeper buffering only pays when tiles are thin and the S loop is long.
    if TS <= 512 and n_s >= 4:
        x_spec = pl.BlockSpec((TB, C, TS), lambda b, s: (b, 0, s),
                              pipeline_mode=pl.Buffered(3))
    else:
        x_spec = pl.BlockSpec((TB, C, TS), lambda b, s: (b, 0, s))

    cost = pl.CostEstimate(
        flops=B * C * S + 2 * B * C * h_pad + 2 * B * h_pad * n_pad,
        transcendentals=0,
        bytes_accessed=(B * C * S_arr * elem
                        + 4 * (w1t.size + b1p.size + w2t.size + b2p.size)
                        + 4 * B * n_pad),
    )

    out_pad = pl.pallas_call(
        kernel,
        out_shape=jax.ShapeDtypeStruct((B, n_pad), jnp.float32),
        grid_spec=pltpu.PrefetchScalarGridSpec(
            num_scalar_prefetch=0,
            grid=(B // TB, n_s),
            in_specs=[
                x_spec,                                             # streamed
                pl.BlockSpec((C, h_pad), lambda b, s: (0, 0)),      # resident
                pl.BlockSpec((1, h_pad), lambda b, s: (0, 0)),      # resident
                pl.BlockSpec((h_pad, n_pad), lambda b, s: (0, 0)),  # resident
                pl.BlockSpec((1, n_pad), lambda b, s: (0, 0)),      # resident
            ],
            out_specs=pl.BlockSpec((TB, n_pad), lambda b, s: (b, 0)),  # acc over s
            scratch_shapes=[pltpu.VMEM((TB, C, 128), jnp.float32)],
        ),
        compiler_params=pltpu.CompilerParams(
            dimension_semantics=("parallel", "arbitrary"),
            vmem_limit_bytes=48 * 1024 * 1024,
        ),
        cost_estimate=cost,
    )(x3, w1t, b1p, w2t, b2p)

    return out_pad[:, :num_classes]


if __name__ == "__main__":
    # Small shapes consistent with the module: in_features == channel dim C.
    B, C, D, H, W = 2, 32, 4, 8, 8
    hidden_size = 32
    num_classes = 8

    key = jax.random.PRNGKey(0)
    kx, kw1, kb1, kw2, kb2, kx2 = jax.random.split(key, 6)

    x = jax.random.normal(kx, (B, C, D, H, W), dtype=jnp.float32)
    # nn.Linear layout: weight [out, in], bias [out].
    w1 = jax.random.normal(kw1, (hidden_size, C), dtype=jnp.float32) * 0.05
    b1 = jax.random.normal(kb1, (hidden_size,), dtype=jnp.float32) * 0.05
    w2 = jax.random.normal(kw2, (num_classes, hidden_size), dtype=jnp.float32) * 0.05
    b2 = jax.random.normal(kb2, (num_classes,), dtype=jnp.float32) * 0.05

    params = prepare_head_params(w1, b1, w2, b2)
    head = jax.jit(functools.partial(classification_head, num_classes=num_classes))

    out = head(x, *params)
    jax.block_until_ready(out)

    # Pure-JAX reference (same semantics as the PyTorch forward).
    def ref_fwd(xin):
        pooled = jnp.mean(xin.reshape(xin.shape[0], xin.shape[1], -1), axis=-1)
        h = jnp.maximum(pooled @ w1.T + b1, 0.0)
        return h @ w2.T + b2

    ref = ref_fwd(x)
    assert out.shape == (B, num_classes)
    assert jnp.allclose(out, ref, atol=1e-4, rtol=1e-4)

    # Ragged-S case (S = 5*6*7 = 210) exercises the in-kernel tail mask
    # (no wrapper-side jnp.pad of the activation).
    x2 = jax.random.normal(kx2, (B, C, 5, 6, 7), dtype=jnp.float32)
    out2 = head(x2, *params)
    jax.block_until_ready(out2)
    assert jnp.allclose(out2, ref_fwd(x2), atol=1e-4, rtol=1e-4)

    print("KERNEL_OK")
</pallas_src>

<mosaic_0001>
module attributes {stable_mosaic.version = 11 : i64} {
  func.func @_head_kernel(%arg0: i32, %arg1: i32, %arg2: memref<2x32x256xf32, #tpu.memory_space<vmem>>, %arg3: memref<32x128xf32, #tpu.memory_space<vmem>>, %arg4: memref<1x128xf32, #tpu.memory_space<vmem>>, %arg5: memref<128x128xf32, #tpu.memory_space<vmem>>, %arg6: memref<1x128xf32, #tpu.memory_space<vmem>>, %arg7: memref<2x128xf32, #tpu.memory_space<vmem>>, %arg8: memref<2x32x128xf32, #tpu.memory_space<vmem>>) attributes {dimension_semantics = [#tpu.dimension_semantics<parallel>, #tpu.dimension_semantics<arbitrary>], iteration_bounds = array<i64: 1, 1>, scalar_prefetch = 0 : i64, scratch_operands = 1 : i64, tpu.core_type = #tpu.core_type<tc>, window_params = [{transform_indices = @transform_0, window_bounds = array<i64: 2, 32, 256>}, {pipeline_mode = #tpu.pipeline_mode<synchronous>, transform_indices = @transform_1, window_bounds = array<i64: 32, 128>}, {pipeline_mode = #tpu.pipeline_mode<synchronous>, transform_indices = @transform_2, window_bounds = array<i64: 1, 128>}, {pipeline_mode = #tpu.pipeline_mode<synchronous>, transform_indices = @transform_3, window_bounds = array<i64: 128, 128>}, {pipeline_mode = #tpu.pipeline_mode<synchronous>, transform_indices = @transform_4, window_bounds = array<i64: 1, 128>}, {transform_indices = @transform_5, window_bounds = array<i64: 2, 128>}]} {
    %c0_i32 = arith.constant 0 : i32
    %0 = arith.cmpi eq, %arg1, %c0_i32 : i32
    %1 = arith.extui %0 : i1 to i32
    %c0_i32_0 = arith.constant 0 : i32
    %2 = arith.cmpi ne, %1, %c0_i32_0 : i32
    scf.if %2 {
      %cst = arith.constant 0.000000e+00 : f32
      %12 = vector.broadcast %cst : f32 to vector<2x32x128xf32>
      %c0_13 = arith.constant 0 : index
      %c0_14 = arith.constant 0 : index
      %c0_15 = arith.constant 0 : index
      %13 = vector.load %arg8[%c0_13, %c0_14, %c0_15] : memref<2x32x128xf32, #tpu.memory_space<vmem>>, vector<2x32x128xf32>
      tpu.vector_store %arg8[%c0_13, %c0_14, %c0_15], %12 {strides = array<i32>} : memref<2x32x128xf32, #tpu.memory_space<vmem>>, vector<2x32x128xf32>,
    } else {
    }
    %c0 = arith.constant 0 : index
    %c0_1 = arith.constant 0 : index
    %c0_2 = arith.constant 0 : index
    %3 = vector.load %arg8[%c0, %c0_1, %c0_2] : memref<2x32x128xf32, #tpu.memory_space<vmem>>, vector<2x32x128xf32>
    %c0_3 = arith.constant 0 : index
    %c0_4 = arith.constant 0 : index
    %c0_5 = arith.constant 0 : index
    %4 = vector.load %arg2[%c0_3, %c0_4, %c0_5] : memref<2x32x256xf32, #tpu.memory_space<vmem>>, vector<2x32x128xf32>
    %5 = arith.addf %3, %4 : vector<2x32x128xf32>
    %c0_6 = arith.constant 0 : index
    %c0_7 = arith.constant 0 : index
    %c128 = arith.constant 128 : index
    %6 = vector.load %arg2[%c0_6, %c0_7, %c128] : memref<2x32x256xf32, #tpu.memory_space<vmem>>, vector<2x32x128xf32>
    %7 = arith.addf %5, %6 : vector<2x32x128xf32>
    %c0_8 = arith.constant 0 : index
    %c0_9 = arith.constant 0 : index
    %c0_10 = arith.constant 0 : index
    %8 = vector.load %arg8[%c0_8, %c0_9, %c0_10] : memref<2x32x128xf32, #tpu.memory_space<vmem>>, vector<2x32x128xf32>
    tpu.vector_store %arg8[%c0_8, %c0_9, %c0_10], %7 {strides = array<i32>} : memref<2x32x128xf32, #tpu.memory_space<vmem>>, vector<2x32x128xf32>,
    %c0_i32_11 = arith.constant 0 : i32
    %9 = arith.cmpi eq, %arg1, %c0_i32_11 : i32
    %10 = arith.extui %9 : i1 to i32
    %c0_i32_12 = arith.constant 0 : i32
    %11 = arith.cmpi ne, %10, %c0_i32_12 : i32
    scf.if %11 {
      %c0_13 = arith.constant 0 : index
      %c0_14 = arith.constant 0 : index
      %c0_15 = arith.constant 0 : index
      %12 = vector.load %arg8[%c0_13, %c0_14, %c0_15] : memref<2x32x128xf32, #tpu.memory_space<vmem>>, vector<2x32x128xf32>
      %cst = arith.constant dense<0.000000e+00> : vector<2x32xf32>
      %13 = vector.multi_reduction <add>, %12, %cst [2] : vector<2x32x128xf32> to vector<2x32xf32>
      %cst_16 = arith.constant 3.906250e-03 : f32
      %14 = vector.broadcast %cst_16 : f32 to vector<2x32xf32>
      %15 = arith.mulf %13, %14 : vector<2x32xf32>
      %c0_17 = arith.constant 0 : index
      %c0_18 = arith.constant 0 : index
      %16 = vector.load %arg3[%c0_17, %c0_18] : memref<32x128xf32, #tpu.memory_space<vmem>>, vector<32x128xf32>
      %cst_19 = arith.constant dense<0.000000e+00> : vector<2x128xf32>
      %17 = tpu.matmul %15, %16, %cst_19 {dimension_numbers = #tpu.dot_dimension_numbers<[1], [0], [0], [1], [0, 0, 1, 1], [], []>} : vector<2x32xf32>, vector<32x128xf32>, vector<2x128xf32> -> vector<2x128xf32>
      %c0_20 = arith.constant 0 : index
      %c0_21 = arith.constant 0 : index
      %18 = vector.load %arg4[%c0_20, %c0_21] : memref<1x128xf32, #tpu.memory_space<vmem>>, vector<1x128xf32>
      %19 = vector.broadcast %18 : vector<1x128xf32> to vector<2x128xf32>
      %20 = arith.addf %17, %19 : vector<2x128xf32>
      %cst_22 = arith.constant 0.000000e+00 : f32
      %21 = vector.broadcast %cst_22 : f32 to vector<2x128xf32>
      %22 = arith.maximumf %20, %21 : vector<2x128xf32>
      %c0_23 = arith.constant 0 : index
      %c0_24 = arith.constant 0 : index
      %23 = vector.load %arg5[%c0_23, %c0_24] : memref<128x128xf32, #tpu.memory_space<vmem>>, vector<128x128xf32>
      %cst_25 = arith.constant dense<0.000000e+00> : vector<2x128xf32>
      %24 = tpu.matmul %22, %23, %cst_25 {dimension_numbers = #tpu.dot_dimension_numbers<[1], [0], [0], [1], [0, 0, 1, 1], [], []>} : vector<2x128xf32>, vector<128x128xf32>, vector<2x128xf32> -> vector<2x128xf32>
      %c0_26 = arith.constant 0 : index
      %c0_27 = arith.constant 0 : index
      %25 = vector.load %arg6[%c0_26, %c0_27] : memref<1x128xf32, #tpu.memory_space<vmem>>, vector<1x128xf32>
      %26 = vector.broadcast %25 : vector<1x128xf32> to vector<2x128xf32>
      %27 = arith.addf %24, %26 : vector<2x128xf32>
      %c0_28 = arith.constant 0 : index
      %c0_29 = arith.constant 0 : index
      %28 = vector.load %arg7[%c0_28, %c0_29] : memref<2x128xf32, #tpu.memory_space<vmem>>, vector<2x128xf32>
      tpu.vector_store %arg7[%c0_28, %c0_29], %27 {strides = array<i32>} : memref<2x128xf32, #tpu.memory_space<vmem>>, vector<2x128xf32>,
    } else {
    }
    return
  }
  func.func @transform_0(%arg0: i32, %arg1: i32) -> (i32, i32, i32) {
    %c0_i32 = arith.constant 0 : i32
    %c0_i32_0 = arith.constant 0 : i32
    return %arg0, %c0_i32, %arg1 : i32, i32, i32
  }
  func.func @transform_1(%arg0: i32, %arg1: i32) -> (i32, i32) {
    %c0_i32 = arith.constant 0 : i32
    %c0_i32_0 = arith.constant 0 : i32
    %c0_i32_1 = arith.constant 0 : i32
    return %c0_i32, %c0_i32_0 : i32, i32
  }
  func.func @transform_2(%arg0: i32, %arg1: i32) -> (i32, i32) {
    %c0_i32 = arith.constant 0 : i32
    %c0_i32_0 = arith.constant 0 : i32
    %c0_i32_1 = arith.constant 0 : i32
    return %c0_i32, %c0_i32_0 : i32, i32
  }
  func.func @transform_3(%arg0: i32, %arg1: i32) -> (i32, i32) {
    %c0_i32 = arith.constant 0 : i32
    %c0_i32_0 = arith.constant 0 : i32
    %c0_i32_1 = arith.constant 0 : i32
    return %c0_i32, %c0_i32_0 : i32, i32
  }
  func.func @transform_4(%arg0: i32, %arg1: i32) -> (i32, i32) {
    %c0_i32 = arith.constant 0 : i32
    %c0_i32_0 = arith.constant 0 : i32
    %c0_i32_1 = arith.constant 0 : i32
    return %c0_i32, %c0_i32_0 : i32, i32
  }
  func.func @transform_5(%arg0: i32, %arg1: i32) -> (i32, i32) {
    %c0_i32 = arith.constant 0 : i32
    %c0_i32_0 = arith.constant 0 : i32
    return %arg0, %c0_i32 : i32, i32
  }
}

</mosaic_0001>

<bundles_post_ra>
// kernel: classification_head.1
= control target key start
LH: loop header
LB: loop body
LE: loop exit
PB: predicated region body
PF: predicated region fallthrough
CT: control target
= control target key end

     0   :  { %s415_s0 = inlined_call_operand.vmem [shape: f32[2,32,256], index: 0, kind: input, shape index: {}]   ;;  %s416_s1 = inlined_call_operand.vmem [shape: f32[32,128], index: 1, kind: input, shape index: {}]   ;;  %s417_s2 = inlined_call_operand.vmem [shape: f32[1,128], index: 2, kind: input, shape index: {}]   ;;  %s418_s3 = inlined_call_operand.vmem [shape: f32[128,128], index: 3, kind: input, shape index: {}]   ;;  %s419_s4 = inlined_call_operand.vmem [shape: f32[1,128], index: 4, kind: input, shape index: {}]   ;;  %s420_s5 = inlined_call_operand.hbm [shape: f32[2,128], index: 5, kind: output, shape index: {}]  }
   0x1   :  { %v45_v0 = vld [vmem:[%s415_s0 + $0x40] sm:$0xff]  ;;  %v61_v1 = vld [vmem:[%s415_s0 + $0x48] sm:$0xff]  ;;  %v46_v9 = vld [vmem:[%s415_s0 + $0x50] sm:$0xff] }
   0x2   :  { %v41_v2 = vld [vmem:[%s415_s0] sm:$0xff]  ;;  %v69_v3 = vadd.f32 %v61_v1, %v45_v0  ;;  %v57_v4 = vld [vmem:[%s415_s0 + $0x8] sm:$0xff]  ;;  %v62_v10 = vld [vmem:[%s415_s0 + $0x58] sm:$0xff] }
   0x3   :  { %v43_v5 = vld [vmem:[%s415_s0 + $0x20] sm:$0xff]  ;;  %v59_v6 = vld [vmem:[%s415_s0 + $0x28] sm:$0xff]  ;;  %v65_v7 = vadd.f32 %v57_v4, %v41_v2  ;;  %v42_v11 = vld [vmem:[%s415_s0 + $0x10] sm:$0xff] }
   0x4   :  { %v67_v8 = vadd.f32 %v59_v6, %v43_v5  ;;  %100 = vadd.xlane.f32.xlu1 %v69_v3  ;;  %v58_v12 = vld [vmem:[%s415_s0 + $0x18] sm:$0xff]  ;;  %v47_v13 = vld [vmem:[%s415_s0 + $0x60] sm:$0xff]  ;;  %v63_v14 = vld [vmem:[%s415_s0 + $0x68] sm:$0xff] }
   0x5   :  { %92 = vadd.xlane.f32.xlu0 %v65_v7 }
   0x6   :  { %96 = vadd.xlane.f32.xlu2 %v67_v8 }
   0x7   :  { %10 = vsyncpa [#allocation4], 0  ;;  %v70_v15 = vadd.f32 %v62_v10, %v46_v9  ;;  %v66_v16 = vadd.f32 %v58_v12, %v42_v11  ;;  %v71_v17 = vadd.f32 %v63_v14, %v47_v13  ;;  %v48_v18 = vld [vmem:[%s415_s0 + $0x70] sm:$0xff]  ;;  %v64_v19 = vld [vmem:[%s415_s0 + $0x78] sm:$0xff]  ;;  %v132_v38 = vlaneseq  ;;  %s267_s15 = smov [#allocation3]   ;;  %s228_s19 = sshll.u32 %s420_s5, 4  ;;  %s229_s19 = int_to_ptr.hbm [resolvable:$true] %s228_s19 }
   0x8   :  { %v44_v20 = vld [vmem:[%s415_s0 + $0x30] sm:$0xff]  ;;  %v60_v21 = vld [vmem:[%s415_s0 + $0x38] sm:$0xff]  ;;  %v72_v22 = vadd.f32 %v64_v19, %v48_v18  ;;  %v117_v26 = vld [vmem:[%s416_s1 + $0x8] sm:$0xff]  ;;  %vm137_vm0 = vcmask 130112   ;;  %vm141_vm1 = vcmask 195712   ;;  %vm145_vm2 = vcmask 261312  }
   0x9   :  { %v68_v23 = vadd.f32 %v60_v21, %v44_v20  ;;  %v119_v24 = vld [vmem:[%s416_s1 + $0x18] sm:$0xff]  ;;  %v118_v25 = vld [vmem:[%s416_s1 + $0x10] sm:$0xff]  ;;  %v116_v27 = vld [vmem:[%s416_s1] sm:$0xff]  ;;  %v133_v41 = vand.u32 127, %v132_v38  ;;  %vm154_vm3 = vcmask 1041409   ;;  %vm156_vm4 = vcmask 261120  }
   0xa   :  { %171 = vmatpush.msra.mxu0 %v119_v24  ;;  %v195_v28 = vld [vmem:[%s418_s3 + $0x78] sm:$0xff]  ;;  %v194_v29 = vld [vmem:[%s418_s3 + $0x70] sm:$0xff]  ;;  %v193_v30 = vld [vmem:[%s418_s3 + $0x68] sm:$0xff]  ;;  %s226_s16 = sshll.u32 %s267_s15, 4  ;;  %s227_s16 = int_to_ptr.vmem [resolvable:$true] %s226_s16 }
   0xb   :  { %200 = vmatpush.msra.mxu1 %v195_v28  ;;  %v192_v31 = vld [vmem:[%s418_s3 + $0x60] sm:$0xff]  ;;  %v191_v32 = vld [vmem:[%s418_s3 + $0x58] sm:$0xff]  ;;  %v190_v34 = vld [vmem:[%s418_s3 + $0x50] sm:$0xff]  ;;  %v135_v44 = vadd.s32 4294967288, %v133_v41  ;;  %v139_v55 = vadd.s32 4294967280, %v133_v41  ;;  %v143_v60 = vadd.s32 4294967272, %v133_v41 }
   0xc   :  { %102 = vadd.xlane.f32.xlu1 %v70_v15  ;;  %172 = vmatpush.msra.mxu0 %v118_v25  ;;  %v189_v37 = vld [vmem:[%s418_s3 + $0x48] sm:$0xff]  ;;  %v188_v39 = vld [vmem:[%s418_s3 + $0x40] sm:$0xff]  ;;  %v187_v40 = vld [vmem:[%s418_s3 + $0x38] sm:$0xff] }
   0xd   :  { %94 = vadd.xlane.f32.xlu0 %v66_v16  ;;  %201 = vmatpush.msra.mxu1 %v194_v29  ;;  %v186_v43 = vld [vmem:[%s418_s3 + $0x30] sm:$0xff]  ;;  %v185_v49 = vld [vmem:[%s418_s3 + $0x28] sm:$0xff]  ;;  %v184_v53 = vld [vmem:[%s418_s3 + $0x20] sm:$0xff] }
   0xe   :  { %104 = vadd.xlane.f32.xlu2 %v71_v17  ;;  %173 = vmatpush.msra.mxu0 %v117_v26  ;;  %v183_v57 = vld [vmem:[%s418_s3 + $0x18] sm:$0xff]  ;;  %v182_v13 = vld [vmem:[%s418_s3 + $0x10] sm:$0xff]  ;;  %v181_v14 = vld [vmem:[%s418_s3 + $0x8] sm:$0xff] }
   0xf   :  { %202 = vmatpush.msra.mxu1 %v193_v30  ;;  %v180_v15 = vld [vmem:[%s418_s3] sm:$0xff] }
  0x10   :  { %174 = vmatpush.msra.mxu0 %v116_v27  ;;  %v239_v16 = vld [vmem:[%s417_s2] ss:$0 sm:$0xff] }
  0x11   :  { %203 = vmatpush.msra.mxu1 %v192_v31  ;;  %v240_v20 = vld [vmem:[%s419_s4] ss:$0 sm:$0xff] }
  0x13   :  { %204 = vmatpush.msra.mxu1 %v191_v32 }
  0x14   :  { %106 = vadd.xlane.f32.xlu1 %v72_v22 }
  0x15   :  { %98 = vadd.xlane.f32.xlu0 %v68_v23  ;;  %205 = vmatpush.msra.mxu1 %v190_v34 }
  0x17   :  { %206 = vmatpush.msra.mxu1 %v189_v37 }
  0x19   :  { %207 = vmatpush.msra.mxu1 %v188_v39 }
  0x1b   :  { %208 = vmatpush.msra.mxu1 %v187_v40 }
  0x1d   :  { %209 = vmatpush.msra.mxu1 %v186_v43 }
  0x1f   :  { %210 = vmatpush.msra.mxu1 %v185_v49 }
  0x21   :  { %211 = vmatpush.msra.mxu1 %v184_v53 }
  0x23   :  { %212 = vmatpush.msra.mxu1 %v183_v57 }
  0x25   :  { %213 = vmatpush.msra.mxu1 %v182_v13 }
  0x27   :  { %214 = vmatpush.msra.mxu1 %v181_v14 }
  0x29   :  { %215 = vmatpush.msra.mxu1 %v180_v15 }
  0x77   :  { %v101_v33 = vpop.xlane.xlu1 %100 }
  0x78   :  { %v93_v35 = vpop.xlane.xlu0 %92  ;;  %v112_v50 = vmul.f32 0.00390625, %v101_v33 }
  0x79   :  { %v97_v36 = vpop.xlane.xlu2 %96  ;;  %v108_v51 = vmul.f32 0.00390625, %v93_v35 }
  0x7a   :  { %v147_v58 = vperm.slane %v112_v50, %v133_v41  ;;  %v110_v59 = vmul.f32 0.00390625, %v97_v36 }
  0x7b   :  { %v134_v61 = vperm.slane %v108_v51, %v133_v41 }
  0x7c   :  { %v140_v5 = vperm.slane %v110_v59, %v139_v55 }
  0x7f   :  { %v103_v42 = vpop.xlane.xlu1 %102 }
  0x80   :  { %v113_v45 = vmul.f32 0.00390625, %v103_v42  ;;  %v95_v46 = vpop.xlane.xlu0 %94 }
  0x81   :  { %v105_v47 = vpop.xlane.xlu2 %104  ;;  %v109_v48 = vmul.f32 0.00390625, %v95_v46 }
  0x82   :  { %v114_v52 = vmul.f32 0.00390625, %v105_v47  ;;  %v148_v54 = vperm.slane %v113_v45, %v135_v44 }
  0x83   :  { %v136_v56 = vperm.slane %v109_v48, %v135_v44 }
  0x84   :  { %v150_v62 = vperm.slane %v114_v52, %v139_v55  ;;  %v149_v0 = vsel %vm137_vm0, %v148_v54, %v147_v58 }
  0x85   :  { %v138_v3 = vsel %vm137_vm0, %v136_v56, %v134_v61 }
  0x86   :  { %v151_v8 = vsel %vm141_vm1, %v150_v62, %v149_v0  ;;  %v142_v9 = vsel %vm141_vm1, %v140_v5, %v138_v3 }
  0x87   :  { %v107_v63 = vpop.xlane.xlu1 %106 }
  0x88   :  { %v115_v1 = vmul.f32 0.00390625, %v107_v63  ;;  %v99_v2 = vpop.xlane.xlu0 %98 }
  0x89   :  { %v111_v4 = vmul.f32 0.00390625, %v99_v2 }
  0x8a   :  { %v152_v6 = vperm.slane %v115_v1, %v143_v60 }
  0x8b   :  { %v144_v7 = vperm.slane %v111_v4, %v143_v60 }
  0x8c   :  { %v153_v10 = vsel %vm145_vm2, %v152_v6, %v151_v8 }
  0x8d   :  { %v146_v11 = vsel %vm145_vm2, %v144_v7, %v142_v9 }
  0x8e   :  { %v155_v12 = vsel %vm154_vm3, %v153_v10, %v146_v11 }
  0x8f   :  { %237 = vmatmul.msk.f32.vlgmr.msra.gmra.mxu0 %vm156_vm4, %v155_v12 }
 0x10c   :  { %v176_v17 = vpop.f32.mrf.mxu0 }
 0x10d   :  { %v177_v18 = vadd.f32 %v239_v16, %v176_v17 }
 0x10f   :  { %v179_v19 = vmax.f32 %v177_v18, 0.0 }
 0x111   :  { %216 = vmatmul.f32.vlgmr.msra.gmra.mxu1 %v179_v19 }
 0x18e   :  { %v217_v21 = vpop.f32.mrf.mxu1 }
 0x18f   :  { %v218_v22 = vadd.f32 %v240_v20, %v217_v21 }
 0x191   :  { %220 = vst [vmem:[#allocation3] sm:$0x3] %v218_v22 }
 0x192   :  { %231 = dma.vmem_to_hbm [thread:$0]  %s227_s16, 32, %s229_s19, [#allocation4]  }
 0x193   :  { %265 = dma.done.wait [#allocation4], 32  }
 0x194   :  { %266 = vsyncadd [#allocation4], 4294967264 }
 0x195   :  { %236 = vsyncpa [#allocation4], 1 }

</bundles_post_ra>
